<compile_context>
chip_gen: v6e
topology: v6e:2x2x1
jax: 0.10.0
libtpu: 0.0.40
codegen_flags: <defaults>
</compile_context>

<pallas_src>
import functools

import numpy as np
import jax
import jax.numpy as jnp
from jax import lax
from jax.experimental import pallas as pl
from jax.experimental.pallas import tpu as pltpu

# ----------------------- model configuration (small test sizes) -------------
D_MODEL = 32
N_HEADS = 4
N_POINTS = 2
D_FFN = 64
NUM_LAYERS = [1, 1, 1]          # layers per pyramid stage (res5 / res54 / res543)
RESIDUAL = True
IS_EXCITE_CONV = True           # TRC in conv (1x1) mode
EXCITE_TEMP = 1.0

MAX_TM = 4096                   # max row tile
ROW_ALIGN = 16                  # bf16 sublane packing
TOKEN_DTYPE = jnp.bfloat16      # HBM storage dtype of the token stream
PROJ_WIDTH = 128                # lane-dense combined projection slab width
LN_EPS = 1e-5


def _round_up(x, m):
    return ((x + m - 1) // m) * m


# ============================= Pallas kernels ================================

def _attn_in_proj_kernel(src_ref, pos_ref, ref_ref, mask_ref, w_ref, b_ref,
                         out_ref, *, n_heads, n_levels, n_points, d_model):
    """One matmul produces value | pixel coords | attn-weight logits.

    x = [src | pos | ref_pad] (tm, 2C+8);  W already stacks W_value / W_offsets
    (applied to src and pos) and the ref->pixel-coordinate matrix (W_l, H_l per
    level), bias already carries the -0.5 grid_sample shift.  Output is a single
    lane-dense (tm, 128) slab.
    """
    n_off = n_heads * n_levels * n_points * 2
    n_w = n_heads * n_levels * n_points
    s = src_ref[...].astype(jnp.float32)
    p = pos_ref[...].astype(jnp.float32)
    r = ref_ref[...]                                        # (tm, 8) f32
    x = jnp.concatenate([s, p, r], axis=-1)                 # (tm, 2C+8)
    y = jnp.dot(x, w_ref[...], preferred_element_type=jnp.float32) + b_ref[...]

    val = y[:, :d_model] * mask_ref[...]                    # padding-mask zeroing fused
    coords = y[:, d_model:d_model + n_off]                  # pixel coords (ref*WH + off - 0.5)
    logits = y[:, d_model + n_off:d_model + n_off + n_w]

    # per-head softmax over its contiguous (nL*nP)-wide segment
    seg = n_levels * n_points
    aw_parts = []
    for h in range(n_heads):
        lg = logits[:, h * seg:(h + 1) * seg]
        lg = lg - jnp.max(lg, axis=-1, keepdims=True)
        e = jnp.exp(lg)
        aw_parts.append(e / jnp.sum(e, axis=-1, keepdims=True))
    aw = jnp.concatenate(aw_parts, axis=-1)

    pad = PROJ_WIDTH - (d_model + n_off + n_w)
    pieces = [val, coords, aw]
    if pad > 0:
        pieces.append(jnp.zeros((val.shape[0], pad), jnp.float32))
    out_ref[...] = jnp.concatenate(pieces, axis=-1)


def _deform_sample_kernel(val_ref, proj_ref, out_ref, *, lvl, H, W,
                          n_heads, n_levels, n_points, d_model):
    """Per-level deformable attention sampling.

    The level's value (HW, C) is resident in VMEM; the per-(head, point) 4-tap
    bilinear weights * attention weights are folded into a per-head one-hot
    matrix S_h (tq, HW) built in VMEM and contracted on the MXU with the head's
    value slice.
    """
    head_dim = d_model // n_heads
    n_off = n_heads * n_levels * n_points * 2
    HW = H * W
    v = val_ref[0].astype(jnp.float32)                      # (HW, C)
    q = proj_ref[0]                                         # (tq, 128) f32
    tq = q.shape[0]
    iota = lax.broadcasted_iota(jnp.int32, (tq, HW), 1)

    head_outs = []
    for h in range(n_heads):
        S = jnp.zeros((tq, HW), jnp.float32)
        for pnt in range(n_points):
            cbase = d_model + ((h * n_levels + lvl) * n_points + pnt) * 2
            abase = d_model + n_off + (h * n_levels + lvl) * n_points + pnt
            px = q[:, cbase:cbase + 1]
            py = q[:, cbase + 1:cbase + 2]
            aw = q[:, abase:abase + 1]
            x0f = jnp.floor(px)
            y0f = jnp.floor(py)
            fx = px - x0f
            fy = py - y0f
            x0 = x0f.astype(jnp.int32)
            y0 = y0f.astype(jnp.int32)
            taps = ((0, 0, (1.0 - fx) * (1.0 - fy)),
                    (1, 0, fx * (1.0 - fy)),
                    (0, 1, (1.0 - fx) * fy),
                    (1, 1, fx * fy))
            for dx, dy, wt in taps:
                xi = x0 + dx
                yi = y0 + dy
                valid = ((xi >= 0) & (xi <= W - 1) &
                         (yi >= 0) & (yi <= H - 1)).astype(jnp.float32)
                xc = jnp.clip(xi, 0, W - 1)
                yc = jnp.clip(yi, 0, H - 1)
                flat = yc * W + xc                                     # (tq, 1) int32
                wq = aw * wt * valid                                   # (tq, 1)
                S = S + jnp.where(flat == iota, wq, 0.0)
        head_outs.append(
            jnp.dot(S, v[:, h * head_dim:(h + 1) * head_dim],
                    preferred_element_type=jnp.float32))
    out_ref[0] = jnp.concatenate(head_outs, axis=-1).astype(out_ref.dtype)


def _layer_post_kernel(*refs, has_res):
    """Fused output-proj + residual + LN1 + FFN(relu) + residual + LN2
    (+ optional per-stage pyramid residual).  FFN intermediate stays in VMEM."""
    if has_res:
        (attn_ref, src_ref, res_ref, wo_ref, bo_ref, g1_ref, be1_ref,
         w1_ref, b1_ref, w2_ref, b2_ref, g2_ref, be2_ref, o_ref) = refs
    else:
        (attn_ref, src_ref, wo_ref, bo_ref, g1_ref, be1_ref,
         w1_ref, b1_ref, w2_ref, b2_ref, g2_ref, be2_ref, o_ref) = refs
        res_ref = None
    a = attn_ref[...].astype(jnp.float32)
    x = (src_ref[...].astype(jnp.float32)
         + jnp.dot(a, wo_ref[...], preferred_element_type=jnp.float32) + bo_ref[...])
    mu = jnp.mean(x, axis=-1, keepdims=True)
    var = jnp.mean(jnp.square(x - mu), axis=-1, keepdims=True)
    x = (x - mu) * lax.rsqrt(var + LN_EPS) * g1_ref[...] + be1_ref[...]
    h = jnp.maximum(
        jnp.dot(x, w1_ref[...], preferred_element_type=jnp.float32) + b1_ref[...], 0.0)
    y = x + jnp.dot(h, w2_ref[...], preferred_element_type=jnp.float32) + b2_ref[...]
    mu2 = jnp.mean(y, axis=-1, keepdims=True)
    var2 = jnp.mean(jnp.square(y - mu2), axis=-1, keepdims=True)
    y = (y - mu2) * lax.rsqrt(var2 + LN_EPS) * g2_ref[...] + be2_ref[...]
    if has_res:
        y = y + res_ref[...].astype(jnp.float32)
    o_ref[...] = y.astype(o_ref.dtype)


def _trc_kernel(prev_ref, curr_ref, w_ref, r2d_ref, b_ref, o_ref, *, temp):
    """Fused TRC (conv mode) in (C-on-sublane, HW-on-lane) layout:
    channel-reduce prev with a (1,C) left-multiply (MXU), bilinear-resize the
    single-channel map via a resize-matrix matmul, sigmoid, gate multiply."""
    pv = prev_ref[0].astype(jnp.float32)                                 # (C, HWp)
    m = jnp.dot(w_ref[...], pv, preferred_element_type=jnp.float32)      # (1, HWp)
    m = jnp.dot(m, r2d_ref[...], preferred_element_type=jnp.float32)     # (1, HWc)
    gate = jax.nn.sigmoid(temp * (m + b_ref[...]))                       # (1, HWc)
    o_ref[0] = (curr_ref[0].astype(jnp.float32) * gate).astype(o_ref.dtype)


# ------------------------- row-tiled pallas_call helper ----------------------

def _row_tiling(M):
    Mp = _round_up(M, ROW_ALIGN)
    if Mp >= 2 * ROW_ALIGN:
        Mp = _round_up(Mp, 2 * ROW_ALIGN)
        tm = min(MAX_TM, Mp // 2)          # grid >= 2: both v7x TensorCores get work
    else:
        tm = Mp
    Mp = _round_up(Mp, tm)
    return Mp, tm


def _row_tiled_call(kernel, row_ins, bcast_ins, out_width, out_dtype,
                    cost_estimate=None):
    """Run `kernel` over row-tiles of the 2-D `row_ins`, broadcasting `bcast_ins`."""
    M = row_ins[0].shape[0]
    Mp, tm = _row_tiling(M)
    if Mp != M:
        row_ins = [jnp.pad(x, ((0, Mp - M), (0, 0))) for x in row_ins]
    grid = Mp // tm

    in_specs = (
        [pl.BlockSpec((tm, x.shape[1]), lambda i: (i, 0)) for x in row_ins]
        + [pl.BlockSpec(x.shape, lambda i, nd=x.ndim: (0,) * nd) for x in bcast_ins]
    )
    out = pl.pallas_call(
        kernel,
        grid=(grid,),
        in_specs=in_specs,
        out_specs=pl.BlockSpec((tm, out_width), lambda i: (i, 0)),
        out_shape=jax.ShapeDtypeStruct((Mp, out_width), out_dtype),
        compiler_params=pltpu.CompilerParams(dimension_semantics=("parallel",)),
        cost_estimate=cost_estimate,
    )(*row_ins, *bcast_ins)
    return out[:M] if Mp != M else out


# ========================= deformable sampling wrapper =======================

def _deform_sample_level(proj, value_lvl, lvl, H, W, n_levels):
    """proj: (B, Lq, 128) f32 combined slab; value_lvl: (B, H*W, C) f32."""
    B, Lq, _ = proj.shape
    C = D_MODEL
    tq = min(512, _round_up(Lq, 8))
    Lqp = _round_up(Lq, tq)
    if Lqp != Lq:
        proj = jnp.pad(proj, ((0, 0), (0, Lqp - Lq), (0, 0)))
    HW = H * W
    ce = pl.CostEstimate(
        flops=int(2 * B * Lqp * HW * C + 16 * B * Lqp * HW * N_HEADS * N_POINTS),
        transcendentals=0,
        bytes_accessed=int(4 * (B * HW * C + B * Lqp * PROJ_WIDTH + B * Lqp * C)))
    out = pl.pallas_call(
        functools.partial(_deform_sample_kernel, lvl=lvl, H=H, W=W,
                          n_heads=N_HEADS, n_levels=n_levels,
                          n_points=N_POINTS, d_model=C),
        grid=(B, Lqp // tq),
        in_specs=[pl.BlockSpec((1, HW, C), lambda b, qi: (b, 0, 0)),
                  pl.BlockSpec((1, tq, PROJ_WIDTH), lambda b, qi: (b, qi, 0))],
        out_specs=pl.BlockSpec((1, tq, C), lambda b, qi: (b, qi, 0)),
        out_shape=jax.ShapeDtypeStruct((B, Lqp, C), jnp.float32),
        compiler_params=pltpu.CompilerParams(
            dimension_semantics=("parallel", "parallel")),
        cost_estimate=ce,
    )(value_lvl, proj)
    return out[:, :Lq] if Lqp != Lq else out


# ====================== MS-Deformable-Attention encoder layer ===============
# NOTE: MSDeformAttnTransformerEncoderLayer is external to the provided source;
# this is the standard Deformable-DETR encoder layer (eval mode, dropout=identity).

def encoder_layer_forward(p, src, pos, reference_points, spatial_shapes,
                          padding_mask, stage_residual=None):
    B, L, C = src.shape
    nL = len(spatial_shapes)
    nHLP = N_HEADS * nL * N_POINTS
    n_off = nHLP * 2
    n_w = nHLP
    assert C + n_off + n_w <= PROJ_WIDTH
    M = B * L
    a = p["attn"]

    # --- stacked in-projection weight for x = [src | pos | ref_pad] -----------
    zc = jnp.zeros_like(a["w_value"])
    row_src = jnp.concatenate([a["w_value"], a["w_offsets"], a["w_weights"]], axis=1)
    row_pos = jnp.concatenate([zc, a["w_offsets"], a["w_weights"]], axis=1)
    # reference-point rows: fold the per-level (W_l, H_l) normalizer so the matmul
    # directly yields grid_sample pixel coordinates (ref*WH + off - 0.5).
    A = np.zeros((8, C + n_off + n_w), dtype=np.float32)
    for h in range(N_HEADS):
        for l, (H_, W_) in enumerate(spatial_shapes):
            for pt in range(N_POINTS):
                base = C + ((h * nL + l) * N_POINTS + pt) * 2
                A[l * 2 + 0, base + 0] = float(W_)
                A[l * 2 + 1, base + 1] = float(H_)
    w_full = jnp.concatenate([row_src, row_pos, jnp.asarray(A)], axis=0)   # (2C+8, ·)
    b_full = jnp.concatenate(
        [a["b_value"], a["b_offsets"] - 0.5, a["b_weights"]], axis=0).reshape(1, -1)

    ref_rows = jnp.pad(
        reference_points.reshape(M, 2 * nL).astype(jnp.float32),
        ((0, 0), (0, 8 - 2 * nL)))
    mask_keep = 1.0 - padding_mask.reshape(M, 1).astype(jnp.float32)

    ce_in = pl.CostEstimate(
        flops=int(2 * M * (2 * C + 8) * (C + n_off + n_w) + 20 * M * n_w),
        transcendentals=int(M * n_w),
        bytes_accessed=int(4 * M * (C + 8 + 1 + PROJ_WIDTH)))
    proj = _row_tiled_call(
        functools.partial(_attn_in_proj_kernel, n_heads=N_HEADS, n_levels=nL,
                          n_points=N_POINTS, d_model=C),
        [src.reshape(M, C), pos.reshape(M, C), ref_rows, mask_keep],
        [w_full, b_full],
        PROJ_WIDTH, jnp.float32, cost_estimate=ce_in)
    proj = proj.reshape(B, L, PROJ_WIDTH)

    # --- per-level deformable sampling (level value resident in VMEM) --------
    attn = None
    start = 0
    for lvl, (H_, W_) in enumerate(spatial_shapes):
        hw = H_ * W_
        value_lvl = proj[:, start:start + hw, :C]
        part = _deform_sample_level(proj, value_lvl, lvl, H_, W_, nL)
        attn = part if attn is None else attn + part
        start += hw

    # --- fused output-proj + LN1 + FFN + LN2 (+ stage residual) --------------
    has_res = stage_residual is not None
    row_ins = [attn.reshape(M, C), src.reshape(M, C)]
    if has_res:
        row_ins.append(stage_residual.reshape(M, C))
    bcast = [a["w_output"], a["b_output"].reshape(1, C),
             p["ln1_g"].reshape(1, C), p["ln1_b"].reshape(1, C),
             p["w_ffn1"], p["b_ffn1"].reshape(1, D_FFN),
             p["w_ffn2"], p["b_ffn2"].reshape(1, C),
             p["ln2_g"].reshape(1, C), p["ln2_b"].reshape(1, C)]
    ce_post = pl.CostEstimate(
        flops=int(2 * M * C * C + 4 * M * C * D_FFN + 30 * M * C),
        transcendentals=0,
        bytes_accessed=int(4 * M * C + 2 * M * C * (2 + int(has_res))
                           + 4 * (C * C + 2 * C * D_FFN)))
    out = _row_tiled_call(functools.partial(_layer_post_kernel, has_res=has_res),
                          row_ins, bcast, C, src.dtype, cost_estimate=ce_post)
    return out.reshape(B, L, C)


# ================================= TRC =======================================

def _resize_matrix_1d(out_size, in_size):
    """Row-interp matrix matching F.interpolate(mode='bilinear', align_corners=False)."""
    dst = np.arange(out_size, dtype=np.float64)
    src = np.maximum((dst + 0.5) * (in_size / out_size) - 0.5, 0.0)
    i0 = np.minimum(np.floor(src).astype(np.int64), in_size - 1)
    i1 = np.minimum(i0 + 1, in_size - 1)
    w1 = src - i0
    w0 = 1.0 - w1
    R = np.zeros((out_size, in_size), dtype=np.float64)
    R[np.arange(out_size), i0] += w0
    R[np.arange(out_size), i1] += w1
    return R


def trc_forward(p, curr_feat, prev_feat, curr_shape, prev_shape, excite_temp=1.0):
    """TRC conv (1x1) mode; mirrors torch's raw `.view(-1, C, H, W)` of (B, L, C)."""
    # TODO(synk): non-conv (Linear) TRC branch not implemented (config uses conv mode).
    B, L, C = curr_feat.shape
    Hc, Wc = curr_shape
    Hp, Wp = prev_shape
    prev = prev_feat.reshape(B, C, Hp * Wp)     # raw reinterpretation (no permute)
    curr = curr_feat.reshape(B, C, Hc * Wc)
    Ry = _resize_matrix_1d(Hc, Hp)
    Rx = _resize_matrix_1d(Wc, Wp)
    # TODO(synk): use separable (Ry, Rx) matmuls in-kernel for large feature maps;
    # the kron matrix is tiny at these sizes.
    r2dT = jnp.asarray(np.kron(Ry, Rx).T, dtype=jnp.float32)   # (Hp*Wp, Hc*Wc)
    ce = pl.CostEstimate(
        flops=int(B * (2 * C * Hp * Wp + 2 * Hp * Wp * Hc * Wc + 2 * C * Hc * Wc)),
        transcendentals=int(B * Hc * Wc),
        bytes_accessed=int(2 * B * C * (Hp * Wp + 2 * Hc * Wc) + 4 * Hp * Wp * Hc * Wc))
    out = pl.pallas_call(
        functools.partial(_trc_kernel, temp=float(excite_temp)),
        grid=(B,),
        in_specs=[pl.BlockSpec((1, C, Hp * Wp), lambda b: (b, 0, 0)),
                  pl.BlockSpec((1, C, Hc * Wc), lambda b: (b, 0, 0)),
                  pl.BlockSpec((1, C), lambda b: (0, 0)),
                  pl.BlockSpec((Hp * Wp, Hc * Wc), lambda b: (0, 0)),
                  pl.BlockSpec((1, 1), lambda b: (0, 0))],
        out_specs=pl.BlockSpec((1, C, Hc * Wc), lambda b: (b, 0, 0)),
        out_shape=jax.ShapeDtypeStruct((B, C, Hc * Wc), curr_feat.dtype),
        compiler_params=pltpu.CompilerParams(dimension_semantics=("parallel",)),
        cost_estimate=ce,
    )(prev, curr, p["w"].reshape(1, C).astype(jnp.float32), r2dT,
      p["b"].reshape(1, 1).astype(jnp.float32))
    return out.reshape(B, L, C)                 # raw reshape back, like torch


# ============================= JAX glue =====================================

def get_reference_points(spatial_shapes, valid_ratios):
    ref_list = []
    for lvl, (H_, W_) in enumerate(spatial_shapes):
        ref_y, ref_x = jnp.meshgrid(
            jnp.linspace(0.5, H_ - 0.5, H_, dtype=jnp.float32),
            jnp.linspace(0.5, W_ - 0.5, W_, dtype=jnp.float32),
            indexing="ij")
        ref_y = ref_y.reshape(-1)[None] / (valid_ratios[:, None, lvl, 1] * H_)
        ref_x = ref_x.reshape(-1)[None] / (valid_ratios[:, None, lvl, 0] * W_)
        ref_list.append(jnp.stack((ref_x, ref_y), -1))
    reference_points = jnp.concatenate(ref_list, axis=1)
    reference_points = reference_points[:, :, None] * valid_ratios[:, None]
    return reference_points


# ========================= Pyramid encoder forward ===========================

def pyramid_encoder_forward(params, src, spatial_shapes, level_start_index,
                            valid_ratios, pos, padding_mask):
    # level_start_index must be a static Python sequence (matches torch's .item()).
    src = src.astype(TOKEN_DTYPE)
    pos = pos.astype(TOKEN_DTYPE)
    reference_points = get_reference_points(spatial_shapes, valid_ratios)

    hw_res5 = int(level_start_index[1])
    hw_res54 = int(level_start_index[-1])
    pos_res5 = pos[:, :hw_res5]
    pos_res54 = pos[:, :hw_res54]
    ref_res5 = reference_points[:, :hw_res5, :1, :]
    ref_res54 = reference_points[:, :hw_res54, :2, :]

    sizes = [h * w for (h, w) in spatial_shapes]
    splits = [int(x) for x in np.cumsum(sizes)[:-1]]
    output_res5, output_res4, output_res3 = jnp.split(src, splits, axis=1)

    output_res5 = trc_forward(params["trc"], output_res5, output_res3,
                              spatial_shapes[0], spatial_shapes[-1], EXCITE_TEMP)
    pred_res5 = output_res5
    layer_idx = 0
    for _ in range(NUM_LAYERS[0]):
        pred_res5 = encoder_layer_forward(
            params["layers"][layer_idx], pred_res5, pos_res5, ref_res5,
            spatial_shapes[0:1], padding_mask[:, :hw_res5],
            stage_residual=output_res5 if RESIDUAL else None)
        layer_idx += 1

    output_res4 = trc_forward(params["trc"], output_res4, output_res3,
                              spatial_shapes[1], spatial_shapes[-1], EXCITE_TEMP)
    pred_res54 = jnp.concatenate([pred_res5, output_res4], axis=1)
    res54 = (jnp.concatenate([output_res5, output_res4], axis=1)
             if RESIDUAL else None)
    for _ in range(NUM_LAYERS[1]):
        pred_res54 = encoder_layer_forward(
            params["layers"][layer_idx], pred_res54, pos_res54, ref_res54,
            spatial_shapes[:2], padding_mask[:, :hw_res54],
            stage_residual=res54)
        layer_idx += 1

    pred_res543 = jnp.concatenate([pred_res54, output_res3], axis=1)
    for _ in range(NUM_LAYERS[2]):
        pred_res543 = encoder_layer_forward(
            params["layers"][layer_idx], pred_res543, pos, reference_points,
            spatial_shapes, padding_mask, stage_residual=None)
        layer_idx += 1
    return pred_res543.astype(jnp.float32)


# ============================ parameter init ================================

def init_params(key):
    stage_levels = [1, 2, 3]
    layer_levels = []
    for s, n in zip(stage_levels, NUM_LAYERS):
        layer_levels += [s] * n

    keys = iter(jax.random.split(key, 256))

    def dense(shape, scale=0.02):
        return scale * jax.random.normal(next(keys), shape, dtype=jnp.float32)

    params = {"layers": []}
    for nl in layer_levels:
        n_off = N_HEADS * nl * N_POINTS * 2
        n_w = N_HEADS * nl * N_POINTS
        lp = {
            "attn": {
                "w_value": dense((D_MODEL, D_MODEL)),
                "b_value": dense((D_MODEL,)),
                "w_offsets": dense((D_MODEL, n_off)),
                "b_offsets": dense((n_off,)),
                "w_weights": dense((D_MODEL, n_w)),
                "b_weights": dense((n_w,)),
                "w_output": dense((D_MODEL, D_MODEL)),
                "b_output": dense((D_MODEL,)),
            },
            "ln1_g": jnp.ones((D_MODEL,), jnp.float32),
            "ln1_b": jnp.zeros((D_MODEL,), jnp.float32),
            "w_ffn1": dense((D_MODEL, D_FFN)),
            "b_ffn1": dense((D_FFN,)),
            "w_ffn2": dense((D_FFN, D_MODEL)),
            "b_ffn2": dense((D_MODEL,)),
            "ln2_g": jnp.ones((D_MODEL,), jnp.float32),
            "ln2_b": jnp.zeros((D_MODEL,), jnp.float32),
        }
        params["layers"].append(lp)
    params["trc"] = {"w": dense((D_MODEL,)), "b": dense((1,))}
    return params


# ================================== main =====================================

if __name__ == "__main__":
    B = 2
    spatial_shapes = [(4, 4), (8, 8), (16, 16)]          # res5, res4, res3
    sizes = [h * w for h, w in spatial_shapes]
    level_start_index = [0] + list(np.cumsum(sizes)[:-1])
    L = int(sum(sizes))

    key = jax.random.PRNGKey(0)
    k_src, k_pos, k_par = jax.random.split(key, 3)
    src = jax.random.normal(k_src, (B, L, D_MODEL), dtype=jnp.float32)
    pos = jax.random.normal(k_pos, (B, L, D_MODEL), dtype=jnp.float32)
    valid_ratios = jnp.ones((B, len(spatial_shapes), 2), dtype=jnp.float32)
    padding_mask = jnp.zeros((B, L), dtype=bool)

    params = init_params(k_par)

    out = pyramid_encoder_forward(params, src, spatial_shapes, level_start_index,
                                  valid_ratios, pos, padding_mask)
    out = jax.block_until_ready(out)
    assert out.shape == (B, L, D_MODEL), out.shape
    assert bool(jnp.all(jnp.isfinite(out)))
    print("KERNEL_OK")
</pallas_src>

<mosaic_0001>
module attributes {stable_mosaic.version = 11 : i64} {
  func.func @_trc_kernel(%arg0: i32, %arg1: memref<1x32x256xbf16, #tpu.memory_space<vmem>>, %arg2: memref<1x32x16xbf16, #tpu.memory_space<vmem>>, %arg3: memref<1x32xf32, #tpu.memory_space<vmem>>, %arg4: memref<256x16xf32, #tpu.memory_space<vmem>>, %arg5: memref<1x1xf32, #tpu.memory_space<vmem>>, %arg6: memref<1x32x16xbf16, #tpu.memory_space<vmem>>) attributes {dimension_semantics = [#tpu.dimension_semantics<parallel>], iteration_bounds = array<i64: 2>, scalar_prefetch = 0 : i64, scratch_operands = 0 : i64, tpu.core_type = #tpu.core_type<tc>, window_params = [{transform_indices = @transform_0, window_bounds = array<i64: 1, 32, 256>}, {transform_indices = @transform_1, window_bounds = array<i64: 1, 32, 16>}, {pipeline_mode = #tpu.pipeline_mode<synchronous>, transform_indices = @transform_2, window_bounds = array<i64: 1, 32>}, {pipeline_mode = #tpu.pipeline_mode<synchronous>, transform_indices = @transform_3, window_bounds = array<i64: 256, 16>}, {pipeline_mode = #tpu.pipeline_mode<synchronous>, transform_indices = @transform_4, window_bounds = array<i64: 1, 1>}, {transform_indices = @transform_5, window_bounds = array<i64: 1, 32, 16>}]} {
    %c0 = arith.constant 0 : index
    %c0_0 = arith.constant 0 : index
    %c0_1 = arith.constant 0 : index
    %0 = vector.load %arg1[%c0, %c0_0, %c0_1] : memref<1x32x256xbf16, #tpu.memory_space<vmem>>, vector<1x32x256xbf16>
    %1 = vector.shape_cast %0 : vector<1x32x256xbf16> to vector<32x256xbf16>
    %2 = arith.extf %1 : vector<32x256xbf16> to vector<32x256xf32>
    %c0_2 = arith.constant 0 : index
    %c0_3 = arith.constant 0 : index
    %3 = vector.load %arg3[%c0_2, %c0_3] : memref<1x32xf32, #tpu.memory_space<vmem>>, vector<1x32xf32>
    %cst = arith.constant dense<0.000000e+00> : vector<1x256xf32>
    %4 = tpu.matmul %3, %2, %cst {dimension_numbers = #tpu.dot_dimension_numbers<[1], [0], [0], [1], [0, 0, 1, 1], [], []>} : vector<1x32xf32>, vector<32x256xf32>, vector<1x256xf32> -> vector<1x256xf32>
    %c0_4 = arith.constant 0 : index
    %c0_5 = arith.constant 0 : index
    %5 = vector.load %arg4[%c0_4, %c0_5] : memref<256x16xf32, #tpu.memory_space<vmem>>, vector<256x16xf32>
    %cst_6 = arith.constant dense<0.000000e+00> : vector<1x16xf32>
    %6 = tpu.matmul %4, %5, %cst_6 {dimension_numbers = #tpu.dot_dimension_numbers<[1], [0], [0], [1], [0, 0, 1, 1], [], []>} : vector<1x256xf32>, vector<256x16xf32>, vector<1x16xf32> -> vector<1x16xf32>
    %c0_7 = arith.constant 0 : index
    %c0_8 = arith.constant 0 : index
    %7 = vector.load %arg5[%c0_7, %c0_8] : memref<1x1xf32, #tpu.memory_space<vmem>>, vector<1x1xf32>
    %8 = vector.broadcast %7 : vector<1x1xf32> to vector<1x16xf32>
    %9 = arith.addf %6, %8 : vector<1x16xf32>
    %cst_9 = arith.constant 1.000000e+00 : f32
    %10 = vector.broadcast %cst_9 : f32 to vector<1x16xf32>
    %11 = arith.mulf %10, %9 : vector<1x16xf32>
    %12 = arith.negf %11 : vector<1x16xf32>
    %13 = math.exp %12 : vector<1x16xf32>
    %cst_10 = arith.constant 1.000000e+00 : f32
    %14 = vector.broadcast %cst_10 : f32 to vector<1x16xf32>
    %15 = arith.addf %14, %13 : vector<1x16xf32>
    %16 = arith.divf %14, %15 : vector<1x16xf32>
    %c0_11 = arith.constant 0 : index
    %c0_12 = arith.constant 0 : index
    %c0_13 = arith.constant 0 : index
    %17 = vector.load %arg2[%c0_11, %c0_12, %c0_13] : memref<1x32x16xbf16, #tpu.memory_space<vmem>>, vector<1x32x16xbf16>
    %18 = vector.shape_cast %17 : vector<1x32x16xbf16> to vector<32x16xbf16>
    %19 = arith.extf %18 : vector<32x16xbf16> to vector<32x16xf32>
    %20 = vector.broadcast %16 : vector<1x16xf32> to vector<32x16xf32>
    %21 = arith.mulf %19, %20 : vector<32x16xf32>
    %22 = arith.truncf %21 : vector<32x16xf32> to vector<32x16xbf16>
    %c0_14 = arith.constant 0 : index
    %c0_15 = arith.constant 0 : index
    %c0_16 = arith.constant 0 : index
    %23 = vector.load %arg6[%c0_14, %c0_15, %c0_16] : memref<1x32x16xbf16, #tpu.memory_space<vmem>>, vector<1x32x16xbf16>
    %24 = vector.shape_cast %23 : vector<1x32x16xbf16> to vector<32x16xbf16>
    %25 = vector.shape_cast %22 : vector<32x16xbf16> to vector<1x32x16xbf16>
    tpu.vector_store %arg6[%c0_14, %c0_15, %c0_16], %25 {strides = array<i32>} : memref<1x32x16xbf16, #tpu.memory_space<vmem>>, vector<1x32x16xbf16>,
    return
  }
  func.func @transform_0(%arg0: i32) -> (i32, i32, i32) {
    %c0_i32 = arith.constant 0 : i32
    %c0_i32_0 = arith.constant 0 : i32
    %c0_i32_1 = arith.constant 0 : i32
    return %arg0, %c0_i32, %c0_i32_0 : i32, i32, i32
  }
  func.func @transform_1(%arg0: i32) -> (i32, i32, i32) {
    %c0_i32 = arith.constant 0 : i32
    %c0_i32_0 = arith.constant 0 : i32
    %c0_i32_1 = arith.constant 0 : i32
    return %arg0, %c0_i32, %c0_i32_0 : i32, i32, i32
  }
  func.func @transform_2(%arg0: i32) -> (i32, i32) {
    %c0_i32 = arith.constant 0 : i32
    %c0_i32_0 = arith.constant 0 : i32
    %c0_i32_1 = arith.constant 0 : i32
    return %c0_i32, %c0_i32_0 : i32, i32
  }
  func.func @transform_3(%arg0: i32) -> (i32, i32) {
    %c0_i32 = arith.constant 0 : i32
    %c0_i32_0 = arith.constant 0 : i32
    %c0_i32_1 = arith.constant 0 : i32
    return %c0_i32, %c0_i32_0 : i32, i32
  }
  func.func @transform_4(%arg0: i32) -> (i32, i32) {
    %c0_i32 = arith.constant 0 : i32
    %c0_i32_0 = arith.constant 0 : i32
    %c0_i32_1 = arith.constant 0 : i32
    return %c0_i32, %c0_i32_0 : i32, i32
  }
  func.func @transform_5(%arg0: i32) -> (i32, i32, i32) {
    %c0_i32 = arith.constant 0 : i32
    %c0_i32_0 = arith.constant 0 : i32
    %c0_i32_1 = arith.constant 0 : i32
    return %arg0, %c0_i32, %c0_i32_0 : i32, i32, i32
  }
}

</mosaic_0001>

<bundles_post_ra>
// kernel: tpu_custom_call.1
= control target key start
LH: loop header
LB: loop body
LE: loop exit
PB: predicated region body
PF: predicated region fallthrough
CT: control target
= control target key end

     0   :  { %s685_s20 = smov 0   ;;  %s808_s0 = inlined_call_operand.vmem [shape: bf16[2,32,256], index: 0, kind: input, shape index: {}]   ;;  %s809_s1 = inlined_call_operand.vmem [shape: bf16[2,32,16], index: 1, kind: input, shape index: {}]   ;;  %s810_s2 = inlined_call_operand.vmem [shape: f32[1,32], index: 2, kind: input, shape index: {}]   ;;  %s811_s3 = inlined_call_operand.vmem [shape: f32[256,16], index: 3, kind: input, shape index: {}]   ;;  %s812_s4 = inlined_call_operand.<no memory space> [shape: f32[1,1], index: 4, kind: input, shape index: {}]   ;;  %s813_s5 = inlined_call_operand.vmem [shape: bf16[2,32,16], index: 5, kind: output, shape index: {}]  }
   0x1   :  { %v10_v0 = vstv %s812_s4 }
   0x2   :  { %11 = vst [vmem:[#allocation2] sm:$0x1] %v10_v0 }
   0x3 LB: > { %s557_s21 = sadd.s32 4294967295, %s648_s20   ;;  %p561_p0 = scmp.ge.s32.totalorder %s648_s20, 1  ;;  %s648_s20 = sphi %s685_s20, %s17_s20  }
   0x4   : > { %p199_p1 = scmp.lt.s32.totalorder %s648_s20, 3 }
   0x6   : > { %p200_p2 = pnand %p561_p0, %p199_p1 }
   0x7   : > { %p232_p3 = scmp.lt.s32.totalorder (!%p200_p2), %s557_s21, 1 }
   0x8   : > { %203 = sbr.rel (%p200_p2) target bundleno = 462 (0x1ce), region = 40 }
   0xd   : > { %v366_v1 = vld [vmem:[%s811_s3 + $0xf8] sm:$0xff]  ;;  %v650_v2 = vmov 0.0   ;;  %v365_v4 = vld [vmem:[%s811_s3 + $0xf0] sm:$0xff]  ;;  %s815_s21 = smov (!%p232_p3, %s557_s21), 1  ;;  %v364_v6 = vld [vmem:[%s811_s3 + $0xe8] sm:$0xff]  ;;  %vm260_vm0 = vcmask 261120   ;;  %v373_v51 = vlaneseq }
   0xe   : > { %328 = vmatprep.mubr.f32.mxu0 %v650_v2  ;;  %592 = vmatprep.subr.mxu1 %v366_v1  ;;  %v350_v3 = vld [vmem:[%s811_s3 + $0x78] sm:$0xff]  ;;  %v349_v5 = vld [vmem:[%s811_s3 + $0x70] sm:$0xff]  ;;  %v348_v7 = vld [vmem:[%s811_s3 + $0x68] sm:$0xff]  ;;  %s576_s8 = sshll.u32 %s815_s21, 5  ;;  %v651_v48 = vmov 0   ;;  %s577_s18 = sshll.u32 %s815_s21, 4 }
   0xf   : > { %593 = vmatpush3.msra.mxu1 %v350_v3  ;;  %v363_v8 = vld [vmem:[%s811_s3 + $0xe0] sm:$0xff]  ;;  %s236_s13 = scalar_lea.vmem %s808_s0, %s576_s8  ;;  %v362_v11 = vld [vmem:[%s811_s3 + $0xd8] sm:$0xff]  ;;  %v361_v20 = vld [vmem:[%s811_s3 + $0xd0] sm:$0xff]  ;;  %637 = vset.pattern.permute.xlu0 %v651_v48  ;;  %v374_v52 = vshrl.u32 %v373_v51, 7  ;;  %s241_s23 = scalar_lea.vmem %s809_s1, %s577_s18  ;;  %vm485_vm1 = vcmask 125952  }
  0x10   : > { %594 = vmatprep.subr.mxu1 %v365_v4  ;;  %v347_v9 = vld [vmem:[%s811_s3 + $0x60] sm:$0xff]  ;;  %v250_v10 = vld [vmem:[%s236_s13 + $0x18] sm:$0xff]  ;;  %v249_v13 = vld [vmem:[%s236_s13 + $0x10] sm:$0xff]  ;;  %s246_s21 = scalar_lea.vmem %s813_s5, %s577_s18 }
  0x11   : > { %595 = vmatpush3.msra.mxu1 %v349_v5  ;;  %v258_v12 = vunpack.c.h.bf16 %v250_v10  ;;  %v248_v14 = vld [vmem:[%s236_s13 + $0x8] sm:$0xff]  ;;  %v346_v15 = vld [vmem:[%s811_s3 + $0x58] sm:$0xff]  ;;  %v257_v16 = vunpack.c.l.bf16 %v250_v10  ;;  %v256_v17 = vunpack.c.h.bf16 %v249_v13  ;;  %v255_v18 = vunpack.c.l.bf16 %v249_v13  ;;  %v247_v19 = vld [vmem:[%s236_s13] sm:$0xff] }
  0x12   : > { %596 = vmatprep.subr.mxu1 %v364_v6  ;;  %v254_v21 = vunpack.c.h.bf16 %v248_v14  ;;  %v345_v22 = vld [vmem:[%s811_s3 + $0x50] sm:$0xff]  ;;  %v253_v23 = vunpack.c.l.bf16 %v248_v14  ;;  %v360_v24 = vld [vmem:[%s811_s3 + $0xc8] sm:$0xff]  ;;  %v252_v25 = vunpack.c.h.bf16 %v247_v19  ;;  %v251_v27 = vunpack.c.l.bf16 %v247_v19  ;;  %v359_v28 = vld [vmem:[%s811_s3 + $0xc0] sm:$0xff] }
  0x13   : > { %597 = vmatpush3.msra.mxu1 %v348_v7  ;;  %288 = vmatprep.subr.mxu0 %v258_v12  ;;  %v344_v26 = vld [vmem:[%s811_s3 + $0x48] sm:$0xff]  ;;  %v343_v29 = vld [vmem:[%s811_s3 + $0x40] sm:$0xff]  ;;  %v358_v31 = vld [vmem:[%s811_s3 + $0xb8] sm:$0xff]  ;;  %v375_v53 = vsub.s32 0, %v374_v52 }
  0x14   : > { %598 = vmatprep.subr.mxu1 %v363_v8  ;;  %289 = vmatpush1.msra.mxu0 %v257_v16  ;;  %v259_v30 = vld [vmem:[%s810_s2] sm:$0x1]  ;;  %v342_v32 = vld [vmem:[%s811_s3 + $0x38] sm:$0xff]  ;;  %v357_v33 = vld [vmem:[%s811_s3 + $0xb0] sm:$0xff] }
  0x15   : > { %599 = vmatpush3.msra.mxu1 %v347_v9  ;;  %290 = vmatprep.subr.mxu0 %v256_v17  ;;  %v341_v34 = vld [vmem:[%s811_s3 + $0x30] sm:$0xff]  ;;  %v356_v35 = vld [vmem:[%s811_s3 + $0xa8] sm:$0xff]  ;;  %v355_v37 = vld [vmem:[%s811_s3 + $0xa0] sm:$0xff] }
  0x16   : > { %600 = vmatprep.subr.mxu1 %v362_v11  ;;  %291 = vmatpush1.msra.mxu0 %v255_v18  ;;  %v340_v36 = vld [vmem:[%s811_s3 + $0x28] sm:$0xff]  ;;  %v339_v38 = vld [vmem:[%s811_s3 + $0x20] sm:$0xff]  ;;  %v354_v39 = vld [vmem:[%s811_s3 + $0x98] sm:$0xff] }
  0x17   : > { %601 = vmatpush3.msra.mxu1 %v346_v15  ;;  %292 = vmatprep.subr.mxu0 %v254_v21  ;;  %v338_v40 = vld [vmem:[%s811_s3 + $0x18] sm:$0xff]  ;;  %v353_v41 = vld [vmem:[%s811_s3 + $0x90] sm:$0xff]  ;;  %v352_v43 = vld [vmem:[%s811_s3 + $0x88] sm:$0xff] }
  0x18   : > { %602 = vmatprep.subr.mxu1 %v361_v20  ;;  %293 = vmatpush1.msra.mxu0 %v253_v23  ;;  %v337_v42 = vld [vmem:[%s811_s3 + $0x10] sm:$0xff]  ;;  %v336_v44 = vld [vmem:[%s811_s3 + $0x8] sm:$0xff]  ;;  %v351_v45 = vld [vmem:[%s811_s3 + $0x80] sm:$0xff] }
  0x19   : > { %603 = vmatpush3.msra.mxu1 %v345_v22  ;;  %294 = vmatprep.subr.mxu0 %v252_v25  ;;  %v335_v46 = vld [vmem:[%s811_s3] sm:$0xff]  ;;  %v591_v0 = vld [vmem:[%s241_s23 + $0x8] sm:$0xff]  }
  0x1a   : > { %604 = vmatprep.subr.mxu1 %v360_v24  ;;  %295 = vmatpush1.msra.mxu0 %v251_v27  ;;  %v367_v47 = vld [vmem:[#allocation2] sm:$0x1]  ;;  %v589_v3 = vunpack.c.l.bf16 %v591_v0  ;;  %v590_v4 = vunpack.c.h.bf16 %v591_v0 }
  0x1b   : > { %605 = vmatpush3.msra.mxu1 %v344_v26  ;;  %568 = vmatmul.mubr.msk.f32.vlgmr.msra.gmra.mxu0 %vm260_vm0, %v259_v30  ;;  %v584_v63 = vld [vmem:[%s241_s23] sm:$0xff]  }
  0x1c   : > { %606 = vmatprep.subr.mxu1 %v359_v28  ;;  %370 = vperm.xlu0 %637, %v367_v47   ;;  %v585_v1 = vunpack.c.l.bf16 %v584_v63  ;;  %v586_v2 = vunpack.c.h.bf16 %v584_v63 }
  0x1d   : > { %607 = vmatpush3.msra.mxu1 %v343_v29 }
  0x1e   : > { %608 = vmatprep.subr.mxu1 %v358_v31 }
  0x1f   : > { %609 = vmatpush3.msra.mxu1 %v342_v32 }
  0x20   : > { %610 = vmatprep.subr.mxu1 %v357_v33 }
  0x21   : > { %611 = vmatpush3.msra.mxu1 %v341_v34 }
  0x22   : > { %612 = vmatprep.subr.mxu1 %v356_v35 }
  0x23   : > { %613 = vmatpush3.msra.mxu1 %v340_v36 }
  0x24   : > { %614 = vmatprep.subr.mxu1 %v355_v37 }
  0x25   : > { %615 = vmatpush3.msra.mxu1 %v339_v38 }
  0x26   : > { %616 = vmatprep.subr.mxu1 %v354_v39 }
  0x27   : > { %617 = vmatpush3.msra.mxu1 %v338_v40 }
  0x28   : > { %618 = vmatprep.subr.mxu1 %v353_v41 }
  0x29   : > { %619 = vmatpush3.msra.mxu1 %v337_v42 }
  0x2a   : > { %620 = vmatprep.subr.mxu1 %v352_v43 }
  0x2b   : > { %621 = vmatpush3.msra.mxu1 %v336_v44 }
  0x2c   : > { %622 = vmatprep.subr.mxu1 %v351_v45 }
  0x2d   : > { %623 = vmatpush3.msra.mxu1 %v335_v46 }
  0x97   : > { %v371_v54 = vpop.permute.xlu0 %370 }
  0x98   : > { %v376_v56 = vrot.slane %v371_v54, %v375_v53 }
  0xdb   : > { %v330_v49 = vpop.f32.mrf.mxu0 }
  0xdd   : > { %v332_v50 = vpop.f32.mrf.mxu0 }
  0xde   : > { %441 = vmatprep.mubr.f32.mxu1 %v332_v50 }
  0xdf   : > { %442 = vmatmul.mubr.f32.vlgmr.msra.gmra.mxu1 %v330_v49 }
 0x19f   : > { %v624_v55 = vpop.f32.mrf.mxu1 }
 0x1a1   : > { %v625_v57 = vpop.f32.mrf.mxu1 }
 0x1a2   : > { %v626_v58 = vadd.f32 %v625_v57, %v624_v55 }
 0x1a4   : > { %v444_v59 = vadd.f32 %v626_v58, %v376_v56 }
 0x1a6   : > { %v569_v60 = vmul.f32 -1.442695, %v444_v59 }
 0x1a8   : > { %638 = vpow2.f32 %v569_v60 }
 0x1b5   : > { %v639_v61 = vpop.eup %638 }
 0x1b6   : > { %v450_v62 = vadd.f32 1.0, %v639_v61 }
 0x1b8   : > { %640 = vrcp.f32 %v450_v62 }
 0x1c5   : > { %v641_v5 = vpop.eup %640 }
 0x1c6   : > { %v464_v6 = vrot.slane %v641_v5, %v375_v53 }
 0x1c8   : > { %v465_v7 = vmul.f32 %v585_v1, %v464_v6  ;;  %v466_v8 = vmul.f32 %v586_v2, %v464_v6  ;;  %v467_v9 = vmul.f32 %v589_v3, %v464_v6  ;;  %v468_v10 = vmul.f32 %v590_v4, %v464_v6 }
 0x1ca   : > { %v579_v11 = vpack.c.bf16 %v465_v7, %v465_v7  ;;  %v580_v12 = vpack.c.bf16 %v466_v8, %v466_v8  ;;  %v581_v13 = vpack.c.bf16 %v467_v9, %v467_v9  ;;  %v582_v14 = vpack.c.bf16 %v468_v10, %v468_v10 }
 0x1cc   : > { %486 = vst.msk [vmem:[%s246_s21] sm:$0xf] %vm485_vm1, %v579_v11  ;;  %487 = vst.msk [vmem:[%s246_s21 + $0x4] sm:$0xf] %vm485_vm1, %v580_v12 }
 0x1cd   : > { %488 = vst.msk [vmem:[%s246_s21 + $0x8] sm:$0xf] %vm485_vm1, %v581_v13  ;;  %489 = vst.msk [vmem:[%s246_s21 + $0xc] sm:$0xf] %vm485_vm1, %v582_v14 }
 0x1ce PF: > { %s17_s20 = sadd.s32 1, %s648_s20  }
 0x1cf   : > { %p14_p4 = scmp.ge.s32.totalorder %s17_s20, 4  }
 0x1d1   :  { %16 = sbr.rel (!%p14_p4) target bundleno = 3 (0x3), region = 73 }

</bundles_post_ra>
